<compile_context>
chip_gen: v7x
topology: tpu7x:2x2x1
jax: 0.10.0
libtpu: 0.0.40
codegen_flags: <defaults>
</compile_context>

<pallas_src>
import jax
import jax.numpy as jnp
from jax import lax
from jax.experimental import pallas as pl
from jax.experimental.pallas import tpu as pltpu

_LANE = 128
_BN_EPS = 1e-5


def _vmem_limit_bytes():
    """Per-generation VMEM limit: ~3/4 of physical, capped at 100 MiB."""
    cap = 128 << 20                      # v5e / v6e physical
    try:
        info = pltpu.get_tpu_info()
        cap = int(getattr(info, "vmem_capacity_bytes", cap))
    except Exception:
        pass
    return int(min((cap * 3) // 4, 100 << 20))   # ~48 MiB on v7x, ~96 MiB else


def _pick_hw_tile(hw, per_px_bytes, vmem_budget):
    """Largest multiple-of-128 tile that divides hw and fits the budget."""
    if hw % _LANE != 0:
        return hw                        # single full-extent block
    max_px = max(_LANE, vmem_budget // max(per_px_bytes, 1))
    tile = max(_LANE, min(hw, (max_px // _LANE) * _LANE))
    while hw % tile != 0:                # 128 divides hw, so this terminates
        tile -= _LANE
    return tile


def _conv_stats_kernel(w_ref, p_ref, o_ref, sum_ref, ssq_ref):
    """One-matmul 3x3 conv tile + single-pass partial BN statistics.

    w_ref:   (Cout, 9*Cin)   folded conv weight (resident)
    p_ref:   (1, 9*Cin, T)   im2col patches for one image / HW tile
    o_ref:   (1, Cout, T)    f32 conv output tile (channel-major, lane-dense)
    sum_ref: (1, Cout, 1)    per-image sum, accumulated over the HW-tile axis
    ssq_ref: (1, Cout, 1)    per-image raw sum of squares, accumulated
    """
    k, t = p_ref.shape[1], p_ref.shape[2]
    acc = jnp.dot(w_ref[...], p_ref[...].reshape(k, t),
                  preferred_element_type=jnp.float32,
                  precision=lax.Precision.HIGHEST)      # (Cout, T) f32
    o_ref[...] = acc[None].astype(o_ref.dtype)

    @pl.when(pl.program_id(1) == 0)
    def _():
        sum_ref[...] = jnp.zeros_like(sum_ref)
        ssq_ref[...] = jnp.zeros_like(ssq_ref)

    sum_ref[...] += jnp.sum(acc, axis=1, keepdims=True)[None]
    ssq_ref[...] += jnp.sum(acc * acc, axis=1, keepdims=True)[None]


def _bn_relu_kernel(y_ref, scale_ref, shift_ref, o_ref):
    """Fused BN scale/shift + ReLU on a channel-major (Cout, T) tile.

    y_ref:     (1, Cout, T)  f32 conv tile
    scale_ref: (Cout, 1)     gamma * rsqrt(var + eps)
    shift_ref: (Cout, 1)     beta - mean * scale
    o_ref:     (1, Cout, T)  output tile (lane-dense store, no transpose)
    """
    y = y_ref[0].astype(jnp.float32)
    y = y * scale_ref[...] + shift_ref[...]            # per-channel broadcast
    o_ref[...] = jnp.maximum(y, 0.0)[None].astype(o_ref.dtype)


def inconv_forward(x_nchw, weight_oihw, gamma, beta, eps=_BN_EPS):
    """inconv forward: x (B, Cin, H, W) NCHW -> (B, Cout, H, W) NCHW."""
    B, Cin, H, W = x_nchw.shape
    Cout = weight_oihw.shape[0]
    HW = H * W
    K = 9 * Cin

    # Fold weights to (Cout, 9*Cin); tap index = (dh*3 + dw)*Cin + c.
    w = jnp.transpose(weight_oihw, (0, 2, 3, 1)).reshape(Cout, K)

    # Host/XLA-side im2col of the (small) input: (B, 9*Cin, HW), same tap order.
    xp = jnp.pad(x_nchw, ((0, 0), (0, 0), (1, 1), (1, 1)))
    taps = [xp[:, :, dh:dh + H, dw:dw + W]
            for dh in range(3) for dw in range(3)]
    patches = jnp.concatenate(taps, axis=1).reshape(B, K, HW)

    # Tile the HW axis from the per-generation VMEM budget (double-buffered
    # patch block + double-buffered f32 output block per pixel).
    vmem_limit = _vmem_limit_bytes()
    x_bytes = jnp.dtype(x_nchw.dtype).itemsize
    per_px = 2 * K * x_bytes + 2 * Cout * 4
    hw_tile = _pick_hw_tile(HW, per_px, vmem_limit - (2 << 20))
    n_tiles = HW // hw_tile

    # Pass 1: conv (single MXU matmul per tile, written straight to the output
    # block) + per-image partial BN stats, pipelined over (batch, HW tiles).
    conv_f32, img_sum, img_ssq = pl.pallas_call(
        _conv_stats_kernel,
        out_shape=(
            jax.ShapeDtypeStruct((B, Cout, HW), jnp.float32),
            jax.ShapeDtypeStruct((B, Cout, 1), jnp.float32),
            jax.ShapeDtypeStruct((B, Cout, 1), jnp.float32),
        ),
        grid=(B, n_tiles),
        in_specs=[
            pl.BlockSpec((Cout, K), lambda b, j: (0, 0)),
            pl.BlockSpec((1, K, hw_tile), lambda b, j: (b, 0, j)),
        ],
        out_specs=(
            pl.BlockSpec((1, Cout, hw_tile), lambda b, j: (b, 0, j)),
            pl.BlockSpec((1, Cout, 1), lambda b, j: (b, 0, 0)),
            pl.BlockSpec((1, Cout, 1), lambda b, j: (b, 0, 0)),
        ),
        compiler_params=pltpu.CompilerParams(
            dimension_semantics=("parallel", "arbitrary"),
            vmem_limit_bytes=vmem_limit,
        ),
    )(w, patches)

    # Combine per-image stats -> global biased mean/var (stable Chan combine).
    n_img = jnp.float32(HW)
    n_all = jnp.float32(B * HW)
    sums = img_sum[:, :, 0]                              # (B, Cout)
    ssqs = img_ssq[:, :, 0]                              # (B, Cout)
    mean_img = sums / n_img
    css_img = ssqs - n_img * mean_img * mean_img         # centered per image
    mean = jnp.sum(sums, axis=0) / n_all                 # (Cout,)
    var = (jnp.sum(css_img, axis=0)
           + n_img * jnp.sum((mean_img - mean[None, :]) ** 2, axis=0)) / n_all

    scale = gamma.astype(jnp.float32) * lax.rsqrt(var + eps)
    shift = beta.astype(jnp.float32) - mean * scale

    # Pass 2: fused affine + ReLU on channel-major tiles (no transpose).
    out = pl.pallas_call(
        _bn_relu_kernel,
        out_shape=jax.ShapeDtypeStruct((B, Cout, HW), x_nchw.dtype),
        grid=(B, n_tiles),
        in_specs=[
            pl.BlockSpec((1, Cout, hw_tile), lambda b, j: (b, 0, j)),
            pl.BlockSpec((Cout, 1), lambda b, j: (0, 0)),
            pl.BlockSpec((Cout, 1), lambda b, j: (0, 0)),
        ],
        out_specs=pl.BlockSpec((1, Cout, hw_tile), lambda b, j: (b, 0, j)),
        compiler_params=pltpu.CompilerParams(
            dimension_semantics=("parallel", "parallel"),
            vmem_limit_bytes=vmem_limit,
        ),
    )(conv_f32, scale.reshape(Cout, 1), shift.reshape(Cout, 1))

    return out.reshape(B, Cout, H, W)                    # metadata-only reshape


def _reference(x_nchw, weight_oihw, gamma, beta, eps=_BN_EPS):
    """Pure-JAX reference matching PyTorch conv3x3 + BN(train) + ReLU."""
    conv = lax.conv_general_dilated(
        x_nchw.astype(jnp.float32), weight_oihw.astype(jnp.float32),
        window_strides=(1, 1), padding=((1, 1), (1, 1)),
        dimension_numbers=("NCHW", "OIHW", "NCHW"),
        precision=lax.Precision.HIGHEST)
    mean = jnp.mean(conv, axis=(0, 2, 3), keepdims=True)
    var = jnp.mean((conv - mean) ** 2, axis=(0, 2, 3), keepdims=True)
    y = (conv - mean) * lax.rsqrt(var + eps)
    y = y * gamma.reshape(1, -1, 1, 1) + beta.reshape(1, -1, 1, 1)
    return jnp.maximum(y, 0.0)


if __name__ == "__main__":
    key = jax.random.PRNGKey(0)
    k_x, k_w = jax.random.split(key)

    B, Cin, Cout, H, W = 2, 4, 8, 16, 16

    x = jax.random.normal(k_x, (B, Cin, H, W), dtype=jnp.float32)
    weight = 0.1 * jax.random.normal(k_w, (Cout, Cin, 3, 3), dtype=jnp.float32)
    gamma = jnp.ones((Cout,), dtype=jnp.float32)    # BN weight init = 1
    beta = jnp.zeros((Cout,), dtype=jnp.float32)    # BN bias init = 0

    out = jax.block_until_ready(inconv_forward(x, weight, gamma, beta))
    ref = _reference(x, weight, gamma, beta)

    assert out.shape == (B, Cout, H, W), out.shape
    err = float(jnp.max(jnp.abs(out - ref)))
    assert err < 5e-3, f"mismatch vs reference: max abs err = {err:.3e}"

    print("KERNEL_OK")
</pallas_src>

<mosaic_0001>
module attributes {stable_mosaic.version = 11 : i64} {
  func.func @_conv_stats_kernel(%arg0: i32, %arg1: i32, %arg2: memref<8x36xf32, #tpu.memory_space<vmem>>, %arg3: memref<1x36x256xf32, #tpu.memory_space<vmem>>, %arg4: memref<1x8x256xf32, #tpu.memory_space<vmem>>, %arg5: memref<1x8x1xf32, #tpu.memory_space<vmem>>, %arg6: memref<1x8x1xf32, #tpu.memory_space<vmem>>) attributes {dimension_semantics = [#tpu.dimension_semantics<parallel>, #tpu.dimension_semantics<arbitrary>], iteration_bounds = array<i64: 2, 1>, scalar_prefetch = 0 : i64, scratch_operands = 0 : i64, tpu.core_type = #tpu.core_type<tc>, window_params = [{pipeline_mode = #tpu.pipeline_mode<synchronous>, transform_indices = @transform_0, window_bounds = array<i64: 8, 36>}, {transform_indices = @transform_1, window_bounds = array<i64: 1, 36, 256>}, {transform_indices = @transform_2, window_bounds = array<i64: 1, 8, 256>}, {transform_indices = @transform_3, window_bounds = array<i64: 1, 8, 1>}, {transform_indices = @transform_4, window_bounds = array<i64: 1, 8, 1>}]} {
    %c0 = arith.constant 0 : index
    %c0_0 = arith.constant 0 : index
    %0 = vector.load %arg2[%c0, %c0_0] : memref<8x36xf32, #tpu.memory_space<vmem>>, vector<8x36xf32>
    %c0_1 = arith.constant 0 : index
    %c0_2 = arith.constant 0 : index
    %c0_3 = arith.constant 0 : index
    %1 = vector.load %arg3[%c0_1, %c0_2, %c0_3] : memref<1x36x256xf32, #tpu.memory_space<vmem>>, vector<1x36x256xf32>
    %2 = vector.shape_cast %1 : vector<1x36x256xf32> to vector<36x256xf32>
    %cst = arith.constant dense<0.000000e+00> : vector<8x256xf32>
    %3 = tpu.matmul %0, %2, %cst {dimension_numbers = #tpu.dot_dimension_numbers<[1], [0], [0], [1], [0, 0, 1, 1], [], []>, precision = #tpu.contract_precision<fp32>} : vector<8x36xf32>, vector<36x256xf32>, vector<8x256xf32> -> vector<8x256xf32>
    %4 = vector.shape_cast %3 : vector<8x256xf32> to vector<1x8x256xf32>
    %c0_4 = arith.constant 0 : index
    %c0_5 = arith.constant 0 : index
    %c0_6 = arith.constant 0 : index
    %5 = vector.load %arg4[%c0_4, %c0_5, %c0_6] : memref<1x8x256xf32, #tpu.memory_space<vmem>>, vector<1x8x256xf32>
    tpu.vector_store %arg4[%c0_4, %c0_5, %c0_6], %4 {strides = array<i32>} : memref<1x8x256xf32, #tpu.memory_space<vmem>>, vector<1x8x256xf32>,
    %c0_i32 = arith.constant 0 : i32
    %6 = arith.cmpi eq, %arg1, %c0_i32 : i32
    %7 = arith.extui %6 : i1 to i32
    %c0_i32_7 = arith.constant 0 : i32
    %8 = arith.cmpi ne, %7, %c0_i32_7 : i32
    scf.if %8 {
      %cst_22 = arith.constant 0.000000e+00 : f32
      %22 = vector.broadcast %cst_22 : f32 to vector<1x8x1xf32>
      %c0_23 = arith.constant 0 : index
      %c0_24 = arith.constant 0 : index
      %c0_25 = arith.constant 0 : index
      %23 = vector.load %arg5[%c0_23, %c0_24, %c0_25] : memref<1x8x1xf32, #tpu.memory_space<vmem>>, vector<1x8x1xf32>
      tpu.vector_store %arg5[%c0_23, %c0_24, %c0_25], %22 {strides = array<i32>} : memref<1x8x1xf32, #tpu.memory_space<vmem>>, vector<1x8x1xf32>,
      %cst_26 = arith.constant 0.000000e+00 : f32
      %24 = vector.broadcast %cst_26 : f32 to vector<1x8x1xf32>
      %c0_27 = arith.constant 0 : index
      %c0_28 = arith.constant 0 : index
      %c0_29 = arith.constant 0 : index
      %25 = vector.load %arg6[%c0_27, %c0_28, %c0_29] : memref<1x8x1xf32, #tpu.memory_space<vmem>>, vector<1x8x1xf32>
      tpu.vector_store %arg6[%c0_27, %c0_28, %c0_29], %24 {strides = array<i32>} : memref<1x8x1xf32, #tpu.memory_space<vmem>>, vector<1x8x1xf32>,
    } else {
    }
    %c0_8 = arith.constant 0 : index
    %c0_9 = arith.constant 0 : index
    %c0_10 = arith.constant 0 : index
    %9 = vector.load %arg5[%c0_8, %c0_9, %c0_10] : memref<1x8x1xf32, #tpu.memory_space<vmem>>, vector<1x8x1xf32>
    %cst_11 = arith.constant dense<0.000000e+00> : vector<8xf32>
    %10 = vector.multi_reduction <add>, %3, %cst_11 [1] : vector<8x256xf32> to vector<8xf32>
    %11 = vector.shape_cast %10 : vector<8xf32> to vector<8x1xf32>
    %12 = vector.shape_cast %11 : vector<8x1xf32> to vector<1x8x1xf32>
    %13 = arith.addf %9, %12 : vector<1x8x1xf32>
    %c0_12 = arith.constant 0 : index
    %c0_13 = arith.constant 0 : index
    %c0_14 = arith.constant 0 : index
    %14 = vector.load %arg5[%c0_12, %c0_13, %c0_14] : memref<1x8x1xf32, #tpu.memory_space<vmem>>, vector<1x8x1xf32>
    tpu.vector_store %arg5[%c0_12, %c0_13, %c0_14], %13 {strides = array<i32>} : memref<1x8x1xf32, #tpu.memory_space<vmem>>, vector<1x8x1xf32>,
    %c0_15 = arith.constant 0 : index
    %c0_16 = arith.constant 0 : index
    %c0_17 = arith.constant 0 : index
    %15 = vector.load %arg6[%c0_15, %c0_16, %c0_17] : memref<1x8x1xf32, #tpu.memory_space<vmem>>, vector<1x8x1xf32>
    %16 = arith.mulf %3, %3 : vector<8x256xf32>
    %cst_18 = arith.constant dense<0.000000e+00> : vector<8xf32>
    %17 = vector.multi_reduction <add>, %16, %cst_18 [1] : vector<8x256xf32> to vector<8xf32>
    %18 = vector.shape_cast %17 : vector<8xf32> to vector<8x1xf32>
    %19 = vector.shape_cast %18 : vector<8x1xf32> to vector<1x8x1xf32>
    %20 = arith.addf %15, %19 : vector<1x8x1xf32>
    %c0_19 = arith.constant 0 : index
    %c0_20 = arith.constant 0 : index
    %c0_21 = arith.constant 0 : index
    %21 = vector.load %arg6[%c0_19, %c0_20, %c0_21] : memref<1x8x1xf32, #tpu.memory_space<vmem>>, vector<1x8x1xf32>
    tpu.vector_store %arg6[%c0_19, %c0_20, %c0_21], %20 {strides = array<i32>} : memref<1x8x1xf32, #tpu.memory_space<vmem>>, vector<1x8x1xf32>,
    return
  }
  func.func @transform_0(%arg0: i32, %arg1: i32) -> (i32, i32) {
    %c0_i32 = arith.constant 0 : i32
    %c0_i32_0 = arith.constant 0 : i32
    %c0_i32_1 = arith.constant 0 : i32
    return %c0_i32, %c0_i32_0 : i32, i32
  }
  func.func @transform_1(%arg0: i32, %arg1: i32) -> (i32, i32, i32) {
    %c0_i32 = arith.constant 0 : i32
    %c0_i32_0 = arith.constant 0 : i32
    return %arg0, %c0_i32, %arg1 : i32, i32, i32
  }
  func.func @transform_2(%arg0: i32, %arg1: i32) -> (i32, i32, i32) {
    %c0_i32 = arith.constant 0 : i32
    %c0_i32_0 = arith.constant 0 : i32
    return %arg0, %c0_i32, %arg1 : i32, i32, i32
  }
  func.func @transform_3(%arg0: i32, %arg1: i32) -> (i32, i32, i32) {
    %c0_i32 = arith.constant 0 : i32
    %c0_i32_0 = arith.constant 0 : i32
    %c0_i32_1 = arith.constant 0 : i32
    return %arg0, %c0_i32, %c0_i32_0 : i32, i32, i32
  }
  func.func @transform_4(%arg0: i32, %arg1: i32) -> (i32, i32, i32) {
    %c0_i32 = arith.constant 0 : i32
    %c0_i32_0 = arith.constant 0 : i32
    %c0_i32_1 = arith.constant 0 : i32
    return %arg0, %c0_i32, %c0_i32_0 : i32, i32, i32
  }
}

</mosaic_0001>

<bundles_post_ra>
// kernel: tpu_custom_call.1
= control target key start
LH: loop header
LB: loop body
LE: loop exit
PB: predicated region body
PF: predicated region fallthrough
CT: control target
= control target key end

     0   :  { %10 = vsyncpa [#allocation3], 0  ;;  %s1895_s0 = inlined_call_operand.hbm [shape: f32[8,36], index: 0, kind: input, shape index: {}]   ;;  %s1896_s1 = inlined_call_operand.hbm [shape: f32[2,36,256], index: 1, kind: input, shape index: {}]   ;;  %s1897_s2 = inlined_call_operand.hbm [shape: f32[2,8,256], index: 2, kind: output, shape index: {0}]   ;;  %s1898_s3 = inlined_call_operand.hbm [shape: f32[2,8,1], index: 3, kind: output, shape index: {1}]   ;;  %s1899_s4 = inlined_call_operand.hbm [shape: f32[2,8,1], index: 4, kind: output, shape index: {2}]  }
   0x1   :  { %11 = vsyncpa [#allocation6], 0 }
   0x2   :  { %13 = vsyncpa [#allocation6 + $0x1], 0 }
   0x3   :  { %14 = vsyncpa [#allocation4], 0 }
   0x4   :  { %16 = vsyncpa [#allocation4 + $0x1], 0 }
   0x5   :  { %17 = vsyncpa [#allocation9], 0 }
   0x6   :  { %19 = vsyncpa [#allocation9 + $0x1], 0  ;;  %s1499_s15 = smov 0   ;;  %s1501_s16 = smov 0  }
   0x7   :  { %s1503_s17 = smov 0   ;;  %s1505_s18 = smov 0  }
   0x8   :  { %s1507_s19 = smov 0   ;;  %s1509_s20 = smov 0  }
   0x9 LB: > { %s1530_s21 = sadd.s32 4294967295, %s1464_s20   ;;  %s1900_s22 = sadd.s32 4294967294, %s1464_s20   ;;  %s1464_s20 = sphi %s1509_s20, %s25_s20   ;;  %s1460_s19 = sphi %s1507_s19, %s1928_s19   ;;  %s1456_s18 = sphi %s1505_s18, %s1927_s18   ;;  %s1452_s17 = sphi %s1503_s17, %s1926_s17   ;;  %s1448_s16 = sphi %s1501_s16, %s1925_s16   ;;  %s1444_s15 = sphi %s1499_s15, %s1924_s15  }
   0xa   : > { %s67_s23 = sadd.s32 1, %s1452_s17  ;;  %p74_p0 = scmp.ne.s32.totalorder %s1452_s17, %s1448_s16 }
   0xb   : > { %p75_p1 = scmp.eq.s32.totalorder %s1464_s20, 0  ;;  %p80_p2 = scmp.ne.s32.totalorder %s1448_s16, %s1444_s15 }
   0xc   : > { %p1901_p3 = scmp.eq.s32.totalorder %s1530_s21, 0  ;;  %p106_p4 = scmp.eq.s32.totalorder %s1530_s21, 1 }
   0xd   : > { %p1541_p5 = por %p75_p1, %p74_p0  ;;  %p112_p6 = scmp.eq.s32.totalorder %s1900_s22, 1 }
   0xe   : > { %p1549_p7 = por %p1901_p3, %p80_p2  ;;  %p1553_p8 = por %p106_p4, %p74_p0 }
   0xf   : > { %p1557_p9 = por %p112_p6, %p80_p2  ;;  %p1094_p10 = scmp.ge.s32.totalorder %s1464_s20, 1 }
  0x10   : > { %s1907_s25 = scalar_select %p1549_p7, 1, 0 }
  0x11   : > { %s1908_s26 = scalar_select %p1553_p8, 1, 0 }
  0x12   : > { %s1909_s27 = scalar_select %p1557_p9, 1, 0 }
  0x13   : > { %p171_p11 = scmp.lt.s32.totalorder %s1464_s20, 3  ;;  %s1466_s29 = smov [#allocation2]  }
  0x14   : > { %s184_s30 = sshll.u32 %s1466_s29, 4  ;;  %p1205_p1 = scmp.lt.s32.totalorder %s1464_s20, 2  ;;  %s185_s30 = int_to_ptr.vmem [resolvable:$true] %s184_s30 }
  0x15   : > { %p1564_p13 = pnand %p1094_p10, %p171_p11  ;;  %s37_s7 = sadd.s32 1, %s1460_s19 }
  0x16   : > { %p1573_p4 = pnand %p1205_p1, %p1541_p5  ;;  %p1584_p6 = scmp.ge.s32.totalorder %s37_s7, 2 }
  0x17   : > { %s1910_s28 = scalar_select %p1564_p13, 1, 0 }
  0x18   : > { %p1186_p0 = pneg %p1564_p13  ;;  %s195_s9 = sand.u32 1, %s1452_s17  }
  0x19   : > { %s1911_s5 = scalar_select %p1573_p4, 1, 0 }
  0x1a   : > { %p1579_p2 = pnand %p1186_p0, %p1901_p3  ;;  %s1260_s12 = scalar_lea.hbm %s1895_s0, 128 }
  0x1b   : > { %s1913_s8 = scalar_select %p1584_p6, 1, 0 }
  0x1c   : > { %p1261_p5 = scmp.ne.s32.totalorder %s1895_s0, %s1260_s12  ;;  %p1262_p10 = pneg %p1579_p2 }
  0x1d   : > { %p1267_p0 = scmp.lt.u32.totalorder %s1260_s12, %s1895_s0 }
  0x1e   : > { %p1263_p11 = pnand %p1262_p10, %p1261_p5 }
  0x20   : > { %p1264_p1 = pneg %p1263_p11 }
  0x22   : > { %p1269_p12 = pnand %p1267_p0, %p1264_p1 }
  0x24   : > { %1272 = shalt.err (!%p1269_p12)
}
  0x25   : > { %s1273_s22 = scalar_lea.vmem %s185_s30, 128  ;;  %p1281_p7 = scmp.lt.s32.totalorder %s185_s30, %s185_s30 }
  0x26   : > { %p1274_p3 = scmp.ne.s32.totalorder %s185_s30, %s1273_s22  ;;  %p1282_p13 = scmp.lt.s32.totalorder %s1273_s22, %s1273_s22 }
  0x28   : > { %p1276_p9 = pnand %p1274_p3, %p1262_p10  ;;  %p1283_p4 = por %p1282_p13, %p1281_p7 }
  0x2a   : > { %p1277_p8 = pneg %p1276_p9 }
  0x2c   : > { %p1284_p6 = pnand %p1283_p4, %p1277_p8 }
  0x2e   : > { %1287 = shalt.err (!%p1284_p6)
}
  0x2f   : > { %1189 = dma.hbm_to_vmem [thread:$0]  (!%p1579_p2), %s1895_s0, 128, %s185_s30, [#allocation3]  }
  0x30   : > { %p1914_p3 = scmp.ne.s32.totalorder %s1913_s8, 0  ;;  %s1171_s22 = smul.u32 80, %s195_s9 }
  0x31   : > { %s1172_s13 = smul.u32 1280, %s1460_s19  ;;  %s1624_s8 = scalar_lea.sflag [#allocation6], %s195_s9 }
  0x32   : > { %s1930_s7 = smov (%p1914_p3, %s37_s7), 0  ;;  %s199_s29 = scalar_lea.vmem [#allocation5], %s1171_s22 }
  0x33   : > { %s62_s12 = ssub.s32 %s1460_s19, %s1930_s7  ;;  %s1615_s24 = scalar_lea.hbm %s1896_s1, %s1172_s13 }
  0x34   : > { %p65_p7 = scmp.eq.s32.totalorder %s62_s12, 0  ;;  %s208_s10 = sshll.u32 %s199_s29, 4  ;;  %s1622_s10 = int_to_ptr.vmem [resolvable:$true] %s208_s10 }
  0x35   : > { %s1288_s11 = scalar_lea.hbm %s1615_s24, 1280  ;;  %p1915_p9 = scmp.ne.s32.totalorder %s1911_s5, 0 }
  0x36   : > { %s1620_s30 = scalar_select %p65_p7, %s1452_s17, %s67_s23  }
  0x37   : > { %p1289_p8 = scmp.ne.s32.totalorder %s1615_s24, %s1288_s11  ;;  %p1290_p12 = pneg %p1915_p9 }
  0x38   : > { %s1293_s22 = scalar_lea.hbm %s1896_s1, 2560  ;;  %p1294_p2 = scmp.lt.u32.totalorder %s1615_s24, %s1896_s1 }
  0x39   : > { %p1291_p13 = pnand %p1290_p12, %p1289_p8  ;;  %p1295_p6 = scmp.lt.u32.totalorder %s1293_s22, %s1288_s11 }
  0x3a   : > { %p1297_p10 = scmp.lt.u32.totalorder %s1288_s11, %s1615_s24 }
  0x3b   : > { %p1292_p4 = pneg %p1291_p13  ;;  %p1296_p5 = por %p1295_p6, %p1294_p2 }
  0x3d   : > { %p1298_p11 = por %p1297_p10, %p1296_p5 }
  0x3f   : > { %p1299_p1 = pnand %p1298_p11, %p1292_p4 }
  0x41   : > { %1302 = shalt.err (!%p1299_p1)
}
  0x42   : > { %s1303_s23 = scalar_lea.vmem %s1622_s10, 1280  ;;  %s1467_s9 = smov [#allocation5]  }
  0x43   : > { %p1304_p0 = scmp.ne.s32.totalorder %s1622_s10, %s1303_s23  ;;  %s1308_s29 = sshll.u32 %s1467_s9, 4  ;;  %s1309_s29 = int_to_ptr.vmem [resolvable:$false] %s1308_s29 }
  0x44   : > { %s1310_s12 = scalar_lea.vmem %s1309_s29, 2560  ;;  %p1311_p8 = scmp.lt.s32.totalorder %s1622_s10, %s1309_s29 }
  0x45   : > { %p1306_p3 = pnand %p1304_p0, %p1290_p12  ;;  %p1312_p13 = scmp.lt.s32.totalorder %s1310_s12, %s1303_s23 }
  0x47   : > { %p1307_p7 = pneg %p1306_p3  ;;  %p1313_p2 = por %p1312_p13, %p1311_p8 }
  0x49   : > { %p1314_p6 = pnand %p1313_p2, %p1307_p7 }
  0x4b   : > { %1317 = shalt.err (!%p1314_p6)
}
  0x4c   : > { %s1468_s11 = smov 256   ;;  %s1469_s13 = smov 16  }
  0x4d   : > { %1193 = dma.hbm_to_vmem [thread:$0]  (!%p1915_p9), %s1615_s24, 1280, %s1622_s10, %s1624_s8, %s1468_s11, %s1468_s11, %s1469_s13  }
  0x4e   : > { %p1916_p12 = scmp.ne.s32.totalorder %s1910_s28, 0 }
  0x4f   : > { %p1917_p4 = scmp.eq.s32.totalorder (!%p1916_p12), %s1530_s21, 0 }
  0x50   : > { %220 = sbr.rel (%p1916_p12) target bundleno = 532 (0x214), region = 28 }
  0x57   : > { %1427 = dma.done.wait (%p1917_p4), [#allocation3], 128   ;;  %p1918_p5 = pmov %p1917_p4 }
  0x58   : > { %s1659_s22 = sand.u32 1, %s1448_s16   ;;  %p1919_p10 = scmp.ne.s32.totalorder %s1907_s25, 0 }
  0x59   : > { %1429 = vsyncadd (%p1918_p5), [#allocation3], 4294967168  ;;  %s1173_s6 = smul.u32 80, %s1659_s22  ;;  %s227_s14 = scalar_lea.sflag [#allocation6], %s1659_s22 }
  0x5b   : > { %s230_s23 = scalar_lea.vmem [#allocation5], %s1173_s6 }
  0x5c   : > { %1431 = dma.done.wait (%p1919_p10), %s227_s14, 1280  }
  0x5d   : > { %1433 = vsyncadd (%p1919_p10), %s227_s14, 4294966016  ;;  %v1470_v0 = vmov 0.0   ;;  %v269_v1 = vld [vmem:[%s230_s23 + $0x8] sm:$0xff]  ;;  %v271_v2 = vld [vmem:[%s230_s23 + $0x18] sm:$0xff]  ;;  %vm282_vm0 = vcmask 1043456   ;;  %vm278_vm1 = vcmask 293888  }
  0x5e   : > { %363 = vmatprep.mubr.f32.mxu1 %v1470_v0  ;;  %664 = vmatprep.mubr.f32.mxu0 %v1470_v0  ;;  %v268_v3 = vld [vmem:[%s230_s23] sm:$0xff]  ;;  %v289_v4 = vand.u32 4294901760, %v269_v1  ;;  %v293_v5 = vand.u32 4294901760, %v271_v2  ;;  %v270_v6 = vld [vmem:[%s230_s23 + $0x10] sm:$0xff]  ;;  %v273_v8 = vld [vmem:[%s230_s23 + $0x28] sm:$0xff]  ;;  %s1101_s25 = sshll.u32 %s1659_s22, 3 }
  0x5f   : > { %v291_v7 = vand.u32 4294901760, %v268_v3  ;;  %v275_v9 = vld [vmem:[%s230_s23 + $0x38] sm:$0xff]  ;;  %v295_v10 = vand.u32 4294901760, %v270_v6  ;;  %v297_v11 = vand.u32 4294901760, %v273_v8  ;;  %v272_v13 = vld [vmem:[%s230_s23 + $0x20] sm:$0xff]  ;;  %v274_v14 = vld [vmem:[%s230_s23 + $0x30] sm:$0xff] }
  0x60   : > { %v301_v12 = vand.u32 4294901760, %v275_v9  ;;  %v1669_v15 = vpack.c.bf16 %v293_v5, %v289_v4  ;;  %v1671_v16 = vsub.f32 %v269_v1, %v289_v4  ;;  %v1673_v17 = vsub.f32 %v271_v2, %v293_v5  ;;  %v277_v19 = vld [vmem:[%s230_s23 + $0x48] sm:$0xf]  ;;  %v276_v20 = vld [vmem:[%s230_s23 + $0x40] sm:$0xf]  ;;  %s1765_s28 = scalar_lea.vmem [#allocation8], %s1101_s25 }
  0x61   : > { %v1675_v18 = vsub.f32 %v268_v3, %v291_v7  ;;  %v1677_v21 = vpack.c.bf16 %v295_v10, %v291_v7  ;;  %v1679_v22 = vsub.f32 %v270_v6, %v295_v10  ;;  %v1683_v24 = vsub.f32 %v273_v8, %v297_v11  ;;  %v267_v29 = vld [vmem:[#allocation2] sm:$0xff]  ;;  %s1100_s5 = sshll.u32 %s1659_s22, 4  ;;  %s1771_s10 = scalar_lea.vmem [#allocation10], %s1101_s25 }
  0x62   : > { %v1681_v23 = vpack.c.bf16 %v301_v12, %v297_v11  ;;  %1114 = vmatprep.subr.bf16.mxu1 %v1669_v15  ;;  %1138 = vmatprep.subr.bf16.mxu0 %v1669_v15  ;;  %v1687_v25 = vsub.f32 %v275_v9, %v301_v12  ;;  %v299_v26 = vand.u32 4294901760, %v272_v13  ;;  %v303_v27 = vand.u32 4294901760, %v274_v14  ;;  %s250_s24 = scalar_lea.vmem [#allocation7], %s1100_s5  ;;  %s1112_s8 = sshll.u32 %s1456_s18, 8 }
  0x63   : > { %v287_v28 = vsel %vm282_vm0, %v277_v19, 0  ;;  %1116 = vmatpush1.bf16.msra.mxu1 %v1677_v21  ;;  %1140 = vmatpush1.bf16.msra.mxu0 %v1677_v21  ;;  %v284_v31 = vsel %vm282_vm0, %v276_v20, 0  ;;  %v377_v32 = vand.u32 4294901760, %v1671_v16  ;;  %v389_v33 = vand.u32 4294901760, %v1673_v17  ;;  %s909_s9 = sshll.u32 %s250_s24, 4  ;;  %s1780_s11 = scalar_lea.hbm %s1897_s2, %s1112_s8  ;;  %s910_s9 = int_to_ptr.vmem [resolvable:$true] %s909_s9 }
  0x64   : > { %v1692_v30 = vand.u32 4294901760, %v287_v28  ;;  %1118 = vmatprep.subr.bf16.mxu1 %v1681_v23  ;;  %1142 = vmatprep.subr.bf16.mxu0 %v1681_v23  ;;  %v1699_v34 = vpack.c.bf16 %v303_v27, %v299_v26  ;;  %v1701_v35 = vsub.f32 %v272_v13, %v299_v26  ;;  %v1703_v36 = vsub.f32 %v274_v14, %v303_v27  ;;  %s883_s13 = scalar_lea.sflag [#allocation4], %s1659_s22  ;;  %s1318_s6 = scalar_lea.vmem %s910_s9, 256 }
  0x65   : > { %v1705_v37 = vand.u32 4294901760, %v284_v31  ;;  %v378_v38 = vsub.f32 %v1671_v16, %v377_v32  ;;  %v390_v39 = vsub.f32 %v1673_v17, %v389_v33  ;;  %v1145_v40 = vpack.c.bf16 %v389_v33, %v377_v32  ;;  %p1319_p9 = scmp.ne.s32.totalorder %s910_s9, %s1318_s6  ;;  %p1920_p11 = scmp.ne.s32.totalorder %s1908_s26, 0 }
  0x66   : > { %v280_v41 = vsel %vm278_vm1, %v267_v29, 0  ;;  %v383_v44 = vand.u32 4294901760, %v1675_v18  ;;  %v395_v45 = vand.u32 4294901760, %v1679_v22  ;;  %v401_v48 = vand.u32 4294901760, %v1683_v24  ;;  %s1471_s14 = smov [#allocation7]  }
  0x67   : > { %v1711_v42 = vsub.f32 %v284_v31, %v1705_v37  ;;  %v1713_v43 = vand.u32 4294901760, %v280_v41  ;;  %1120 = vmatpush1.bf16.msra.mxu1 %v1699_v34  ;;  %1144 = vmatpush1.bf16.msra.mxu0 %v1699_v34  ;;  %v379_v46 = vand.u32 4294901760, %v378_v38  ;;  %v391_v47 = vand.u32 4294901760, %v390_v39  ;;  %p1320_p1 = pnand %p1319_p9, %p1920_p11  ;;  %s1322_s23 = sshll.u32 %s1471_s14, 4  ;;  %s1323_s23 = int_to_ptr.vmem [resolvable:$false] %s1322_s23 }
  0x68   : > { %v413_v49 = vand.u32 4294901760, %v1687_v25  ;;  %306 = vmatprep.subr.mxu1 %v1692_v30  ;;  %607 = vmatprep.subr.mxu0 %v1692_v30  ;;  %v384_v51 = vsub.f32 %v1675_v18, %v383_v44  ;;  %v396_v52 = vsub.f32 %v1679_v22, %v395_v45  ;;  %v407_v53 = vand.u32 4294901760, %v1701_v35  ;;  %s1324_s25 = scalar_lea.vmem %s1323_s23, 512  ;;  %p1325_p3 = scmp.lt.s32.totalorder %s910_s9, %s1323_s23 }
  0x69   : > { %v1724_v50 = vsub.f32 %v280_v41, %v1713_v43  ;;  %v1121_v54 = vpack.c.bf16 %v391_v47, %v379_v46  ;;  %v1147_v55 = vpack.c.bf16 %v395_v45, %v383_v44  ;;  %v402_v56 = vsub.f32 %v1683_v24, %v401_v48  ;;  %p1321_p0 = pneg %p1320_p1  ;;  %p1326_p7 = scmp.lt.s32.totalorder %s1324_s25, %s1318_s6 }
  0x6a   : > { %v414_v57 = vsub.f32 %v1687_v25, %v413_v49  ;;  %v385_v59 = vand.u32 4294901760, %v384_v51  ;;  %v397_v60 = vand.u32 4294901760, %v396_v52  ;;  %v1149_v61 = vpack.c.bf16 %v413_v49, %v401_v48 }
  0x6b   : > { %v366_v58 = vand.u32 4294901760, %v1724_v50  ;;  %308 = vmatpush1.msra.mxu1 %v1705_v37  ;;  %609 = vmatpush1.msra.mxu0 %v1705_v37  ;;  %v403_v62 = vand.u32 4294901760, %v402_v56  ;;  %v408_v1 = vsub.f32 %v1701_v35, %v407_v53  ;;  %v419_v2 = vand.u32 4294901760, %v1703_v36  ;;  %p1327_p8 = por %p1326_p7, %p1325_p3 }
  0x6c   : > { %v415_v63 = vand.u32 4294901760, %v414_v57  ;;  %1122 = vmatprep.subr.bf16.mxu1 %v1121_v54  ;;  %1146 = vmatprep.subr.bf16.mxu0 %v1145_v40  ;;  %v424_v4 = vsub.f32 %v287_v28, %v1692_v30  ;;  %v1123_v5 = vpack.c.bf16 %v397_v60, %v385_v59  ;;  %v431_v8 = vand.u32 4294901760, %v1711_v42 }
  0x6d   : > { %v367_v3 = vsub.f32 %v1724_v50, %v366_v58  ;;  %668 = vmatmul.mubr.f32.vlgmr.msra.gmra.mrb[0].mxu0 %v366_v58  ;;  %v409_v6 = vand.u32 4294901760, %v408_v1  ;;  %v420_v7 = vsub.f32 %v1703_v36, %v419_v2  ;;  %v1151_v11 = vpack.c.bf16 %v419_v2, %v407_v53  ;;  %p1328_p13 = pnand %p1327_p8, %p1321_p0 }
  0x6e   : > { %1148 = vmatpush1.bf16.msra.mxu0 %v1147_v55  ;;  %v1125_v10 = vpack.c.bf16 %v415_v63, %v403_v62  ;;  %v425_v12 = vand.u32 4294901760, %v424_v4  ;;  %768 = vmatprep.mubr.f32.mxu0 %v1470_v0  ;;  %v432_v20 = vsub.f32 %v1711_v42, %v431_v8  ;;  %v1129_v28 = vpack.c.bf16 %v1673_v17, %v1671_v16 }
  0x6f   : > { %v368_v9 = vand.u32 4294901760, %v367_v3  ;;  %1150 = vmatprep.subr.bf16.mxu0 %v1149_v61  ;;  %v421_v13 = vand.u32 4294901760, %v420_v7  ;;  %v1131_v29 = vpack.c.bf16 %v1679_v22, %v1675_v18  ;;  %v1133_v31 = vpack.c.bf16 %v1687_v25, %v1683_v24 }
  0x70   : > { %v426_v14 = vsub.f32 %v424_v4, %v425_v12  ;;  %v433_v27 = vand.u32 4294901760, %v432_v20  ;;  %vm864_vm2 = vcmask 7168  }
  0x71   : > { %369 = vmatmul.mubr.f32.vlgmr.msra.gmra.mrb[0].mxu1 %v368_v9  ;;  %v1127_v19 = vpack.c.bf16 %v421_v13, %v409_v6  ;;  %865 = vst.msk [vmem:[%s1765_s28] sm:$0xff] %vm864_vm2, %v1470_v0  ;;  %866 = vst.msk [vmem:[%s1771_s10] sm:$0xff] %vm864_vm2, %v1470_v0 }
  0x72   : > { %1124 = vmatpush1.bf16.msra.mxu1 %v1123_v5  ;;  %489 = vmatprep.mubr.f32.mxu1 %v1470_v0  ;;  %v427_v26 = vand.u32 4294901760, %v426_v14 }
  0x73   : > { %1126 = vmatprep.subr.bf16.mxu1 %v1125_v10  ;;  %1152 = vmatpush1.bf16.msra.mxu0 %v1151_v11 }
  0x74   : > { %709 = vmatprep.subr.mxu0 %v425_v12 }
  0x76   : > { %1128 = vmatpush1.bf16.msra.mxu1 %v1127_v19 }
  0x77   : > { %428 = vmatprep.subr.mxu1 %v427_v26  ;;  %713 = vmatpush1.msra.mxu0 %v431_v8 }
  0x78   : > { %1154 = vmatprep.subr.bf16.mxu0 %v1669_v15  ;;  %770 = vmatmul.mubr.f32.vlgmr.msra.gmra.mrb[0].mxu0 %v1713_v43  ;;  %v1135_v15 = vpack.c.bf16 %v1703_v36, %v1701_v35 }
  0x79   : > { %1156 = vmatpush1.bf16.msra.mxu0 %v1677_v21  ;;  %850 = vmatprep.mubr.f32.mxu0 %v1470_v0 }
  0x7a   : > { %434 = vmatpush1.msra.mxu1 %v433_v27  ;;  %1158 = vmatprep.subr.bf16.mxu0 %v1681_v23 }
  0x7b   : > { %1130 = vmatprep.subr.bf16.mxu1 %v1129_v28  ;;  %491 = vmatmul.mubr.f32.vlgmr.msra.gmra.mrb[0].mxu1 %v1713_v43 }
  0x7c   : > { %1132 = vmatpush1.bf16.msra.mxu1 %v1131_v29  ;;  %581 = vmatprep.mubr.f32.mxu1 %v1470_v0 }
  0x7d   : > { %1134 = vmatprep.subr.bf16.mxu1 %v1133_v31  ;;  %1160 = vmatpush1.bf16.msra.mxu0 %v1699_v34 }
  0x7e   : > { %793 = vmatprep.subr.mxu0 %v1692_v30 }
  0x80   : > { %1136 = vmatpush1.bf16.msra.mxu1 %v1135_v15 }
  0x81   : > { %523 = vmatprep.subr.mxu1 %v424_v4  ;;  %795 = vmatpush1.msra.mxu0 %v1705_v37 }
  0x82   : > { %852 = vmatmul.mubr.f32.vlgmr.msra.gmra.mrb[0].mxu0 %v1713_v43 }
  0x84   : > { %526 = vmatpush1.msra.mxu1 %v1711_v42 }
  0x85   : > { %584 = vmatmul.mubr.f32.vlgmr.msra.gmra.mrb[0].mxu1 %v1724_v50 }
 0x155   : > { %v853_v16 = vpop.f32.mrb[0].mxu0 }
 0x156   : > { %v855_v17 = vpop.f32.mrb[1].mxu0 }
 0x158   : > { %v585_v18 = vpop.f32.mrb[0].mxu1 }
 0x159   : > { %v1161_v21 = vadd.f32 %v853_v16, %v585_v18  ;;  %v587_v22 = vpop.f32.mrb[1].mxu1 }
 0x15a   : > { %v1162_v23 = vadd.f32 %v855_v17, %v587_v22 }
 0x15b   : > { %858 = vst [vmem:[%s250_s24] sm:$0xff] %v1161_v21  ;;  %v875_v24 = vmul.f32 %v1161_v21, %v1161_v21 }
 0x15c   : > { %859 = vst [vmem:[%s250_s24 + $0x8] sm:$0xff] %v1162_v23  ;;  %v868_v25 = vadd.f32 %v1162_v23, %v1161_v21  ;;  %v876_v30 = vmul.f32 %v1162_v23, %v1162_v23 }
 0x15e   : > { %869 = vadd.xlane.f32.xlu0 %v868_v25  ;;  %v877_v32 = vadd.f32 %v876_v30, %v875_v24 }
 0x162   : > { %878 = vadd.xlane.f32.xlu0 %v877_v32 }
 0x163   : > { %1331 = shalt.err (!%p1328_p13)
}
 0x164   : > { %s1332_s22 = scalar_lea.hbm %s1780_s11, 256  ;;  %s1336_s8 = scalar_lea.hbm %s1897_s2, 512 }
 0x165   : > { %p1333_p2 = scmp.ne.s32.totalorder %s1780_s11, %s1332_s22  ;;  %p1337_p4 = scmp.lt.u32.totalorder %s1780_s11, %s1897_s2 }
 0x166   : > { %p1338_p5 = scmp.lt.u32.totalorder %s1336_s8, %s1332_s22  ;;  %p1340_p9 = scmp.lt.u32.totalorder %s1332_s22, %s1780_s11 }
 0x167   : > { %p1334_p6 = pnand %p1333_p2, %p1920_p11 }
 0x168   : > { %p1339_p10 = por %p1338_p5, %p1337_p4 }
 0x169   : > { %p1335_p12 = pneg %p1334_p6 }
 0x16a   : > { %p1341_p1 = por %p1340_p9, %p1339_p10 }
 0x16c   : > { %p1342_p0 = pnand %p1341_p1, %p1335_p12 }
 0x16e   : > { %1345 = shalt.err (!%p1342_p0)
}
 0x16f   : > { %1180 = dma.vmem_to_hbm [thread:$0]  (%p1920_p11), %s910_s9, 256, %s1780_s11, %s883_s13   ;;  %v867_v0 = vld [vmem:[%s1765_s28] sm:$0xff]  ;;  %v874_v35 = vld [vmem:[%s1771_s10] sm:$0xff] }
 0x170   : > { %s887_s6 = sand.u32 1, %s1530_s21   ;;  %s1108_s14 = sshll.u32 %s1456_s18, 7 }
 0x171   : > { %s922_s23 = sshll.u32 %s1765_s28, 4  ;;  %s1809_s5 = scalar_lea.hbm %s1898_s3, %s1108_s14  ;;  %s1811_s23 = int_to_ptr.vmem [resolvable:$true] %s922_s23 }
 0x172   : > { %s935_s9 = sshll.u32 %s1771_s10, 4  ;;  %s1817_s21 = scalar_lea.sflag [#allocation9], %s887_s6  ;;  %s936_s9 = int_to_ptr.vmem [resolvable:$true] %s935_s9 }
 0x173   : > { %s1346_s11 = scalar_lea.vmem %s1811_s23, 128  ;;  %s1472_s13 = smov [#allocation8]  }
 0x174   : > { %p1347_p3 = scmp.ne.s32.totalorder %s1811_s23, %s1346_s11  ;;  %s1350_s24 = sshll.u32 %s1472_s13, 4  ;;  %s1351_s24 = int_to_ptr.vmem [resolvable:$false] %s1350_s24 }
 0x175   : > { %s1352_s8 = scalar_lea.vmem %s1351_s24, 256  ;;  %p1353_p13 = scmp.lt.s32.totalorder %s1811_s23, %s1351_s24 }
 0x176   : > { %p1348_p7 = pnand %p1347_p3, %p1920_p11  ;;  %p1354_p2 = scmp.lt.s32.totalorder %s1352_s8, %s1346_s11 }
 0x178   : > { %p1349_p8 = pneg %p1348_p7  ;;  %p1355_p6 = por %p1354_p2, %p1353_p13 }
 0x17a   : > { %p1356_p12 = pnand %p1355_p6, %p1349_p8 }
 0x1eb   : > { %v870_v33 = vpop.xlane.xlu0 %869 }
 0x1ec   : > { %v871_v34 = vadd.f32 %v870_v33, %v867_v0 }
 0x1ee   : > { %873 = vst.msk [vmem:[%s1765_s28] sm:$0xff] %vm864_vm2, %v871_v34 }
 0x1ef   : > { %v879_v36 = vpop.xlane.xlu0 %878 }
 0x1f0   : > { %1359 = shalt.err (!%p1356_p12)
}
 0x1f1   : > { %s1360_s28 = scalar_lea.hbm %s1809_s5, 128  ;;  %s1364_s6 = scalar_lea.hbm %s1898_s3, 256 }
 0x1f2   : > { %p1361_p4 = scmp.ne.s32.totalorder %s1809_s5, %s1360_s28  ;;  %p1365_p9 = scmp.lt.u32.totalorder %s1809_s5, %s1898_s3 }
 0x1f3   : > { %p1366_p1 = scmp.lt.u32.totalorder %s1364_s6, %s1360_s28  ;;  %p1368_p3 = scmp.lt.u32.totalorder %s1360_s28, %s1809_s5 }
 0x1f4   : > { %p1362_p5 = pnand %p1361_p4, %p1920_p11 }
 0x1f5   : > { %p1367_p0 = por %p1366_p1, %p1365_p9 }
 0x1f6   : > { %p1363_p10 = pneg %p1362_p5 }
 0x1f7   : > { %p1369_p7 = por %p1368_p3, %p1367_p0 }
 0x1f9   : > { %p1370_p8 = pnand %p1369_p7, %p1363_p10 }
 0x1fb   : > { %1373 = shalt.err (!%p1370_p8)
}
 0x1fc   : > { %1181 = dma.vmem_to_hbm [thread:$0]  (%p1920_p11), %s1811_s23, 128, %s1809_s5, %s1817_s21   ;;  %v880_v37 = vadd.f32 %v879_v36, %v874_v35 }
 0x1fd   : > { %s1846_s24 = scalar_lea.hbm %s1899_s4, %s1108_s14  ;;  %s1374_s8 = scalar_lea.vmem %s936_s9, 128 }
 0x1fe   : > { %881 = vst.msk [vmem:[%s1771_s10] sm:$0xff] %vm864_vm2, %v880_v37  ;;  %p1375_p13 = scmp.ne.s32.totalorder %s936_s9, %s1374_s8  ;;  %s1473_s28 = smov [#allocation10]  }
 0x1ff   : > { %s1378_s29 = sshll.u32 %s1473_s28, 4  ;;  %s1379_s29 = int_to_ptr.vmem [resolvable:$false] %s1378_s29 }
 0x200   : > { %p1376_p2 = pnand %p1375_p13, %p1920_p11  ;;  %s1380_s23 = scalar_lea.vmem %s1379_s29, 256 }
 0x201   : > { %p1381_p12 = scmp.lt.s32.totalorder %s936_s9, %s1379_s29  ;;  %p1382_p4 = scmp.lt.s32.totalorder %s1380_s23, %s1374_s8 }
 0x202   : > { %p1377_p6 = pneg %p1376_p2 }
 0x203   : > { %p1383_p5 = por %p1382_p4, %p1381_p12 }
 0x205   : > { %p1384_p10 = pnand %p1383_p5, %p1377_p6 }
 0x207   : > { %1387 = shalt.err (!%p1384_p10)
}
 0x208   : > { %s1388_s18 = scalar_lea.hbm %s1846_s24, 128  ;;  %s1392_s5 = scalar_lea.hbm %s1899_s4, 256 }
 0x209   : > { %p1389_p9 = scmp.ne.s32.totalorder %s1846_s24, %s1388_s18  ;;  %p1393_p3 = scmp.lt.u32.totalorder %s1846_s24, %s1899_s4 }
 0x20a   : > { %p1394_p7 = scmp.lt.u32.totalorder %s1392_s5, %s1388_s18  ;;  %p1396_p13 = scmp.lt.u32.totalorder %s1388_s18, %s1846_s24 }
 0x20b   : > { %p1390_p1 = pnand %p1389_p9, %p1920_p11 }
 0x20c   : > { %p1395_p8 = por %p1394_p7, %p1393_p3 }
 0x20d   : > { %p1391_p0 = pneg %p1390_p1 }
 0x20e   : > { %p1397_p2 = por %p1396_p13, %p1395_p8 }
 0x210   : > { %p1398_p6 = pnand %p1397_p2, %p1391_p0 }
 0x212   : > { %1401 = shalt.err (!%p1398_p6)
}
 0x213   : > { %1182 = dma.vmem_to_hbm [thread:$0]  (%p1920_p11), %s936_s9, 128, %s1846_s24, %s1817_s21  }
 0x214 PF: > { %s947_s25 = sand.u32 1, %s1444_s15   ;;  %p1921_p12 = scmp.ne.s32.totalorder %s1909_s27, 0 }
 0x215   : > { %p1922_p4 = scmp.ge.s32.totalorder %s1464_s20, 2  ;;  %s948_s22 = scalar_lea.sflag [#allocation4], %s947_s25 }
 0x217   : > { %p1195_p5 = pnand %p1922_p4, %p1921_p12 }
 0x219   : > { %1435 = dma.done.wait (!%p1195_p5), %s948_s22, 256  }
 0x21a   : > { %1437 = vsyncadd (!%p1195_p5), %s948_s22, 4294967040  ;;  %s1923_s11 = sadd.s32 4294967294, %s1464_s20  }
 0x21b   : > { %s956_s13 = sand.u32 1, %s1923_s11  }
 0x21c   : > { %s957_s8 = scalar_lea.sflag [#allocation9], %s956_s13 }
 0x21d   : > { %1439 = dma.done.wait (!%p1195_p5), %s957_s8, 256  }
 0x21e   : > { %1441 = vsyncadd (!%p1195_p5), %s957_s8, 4294967040  ;;  %s25_s20 = sadd.s32 1, %s1464_s20   ;;  %s1924_s15 = smov %s1448_s16 }
 0x21f   : > { %p22_p11 = scmp.ge.s32.totalorder %s25_s20, 4   ;;  %s1925_s16 = smov %s1452_s17 }
 0x220   : > { %s1926_s17 = smov %s1620_s30  ;;  %s1927_s18 = smov %s1460_s19 }
 0x221   : > { %s1928_s19 = smov %s1930_s7  ;;  %24 = sbr.rel (!%p22_p11) target bundleno = 9 (0x9), region = 114 }
 0x228   :  { %971 = vsyncpa [#allocation3], 1 }
 0x229   :  { %973 = vsyncpa [#allocation3 + $0x1], 1 }
 0x22a   :  { %974 = vsyncpa [#allocation6], 1 }
 0x22b   :  { %976 = vsyncpa [#allocation6 + $0x1], 1 }
 0x22c   :  { %977 = vsyncpa [#allocation4], 1 }
 0x22d   :  { %979 = vsyncpa [#allocation4 + $0x1], 1 }
 0x22e   :  { %980 = vsyncpa [#allocation9], 1 }
 0x22f   :  { %982 = vsyncpa [#allocation9 + $0x1], 1 }

</bundles_post_ra>
